<compile_context>
chip_gen: v5e
topology: v5e:2x2
jax: 0.10.0
libtpu: 0.0.40
codegen_flags: <defaults>
</compile_context>

<pallas_src>
import math

import jax
import jax.numpy as jnp
from jax.experimental import pallas as pl
from jax.experimental.pallas import tpu as pltpu

LANE = 128


def _round_up(x, m):
    return (x + m - 1) // m * m


def dqn_kernel(x_ref, w1_ref, b1_ref, w2_ref, b2_ref, w3_ref, b3_ref, o_ref):
    # In-kernel cast of x to the MXU compute dtype (bf16 by default) — avoids a
    # separate wrapper-side astype pass over x in HBM.
    x = x_ref[...].astype(w1_ref.dtype)
    # Layer 1: Linear + ReLU, f32 accumulation on the MXU.
    h1 = jnp.dot(x, w1_ref[...], preferred_element_type=jnp.float32)
    h1 = jnp.maximum(h1 + b1_ref[...], 0.0)
    # Layer 2: Linear + ReLU.
    h2 = jnp.dot(h1.astype(w2_ref.dtype), w2_ref[...],
                 preferred_element_type=jnp.float32)
    h2 = jnp.maximum(h2 + b2_ref[...], 0.0)
    # Head: Linear (no activation).  w3/b3 are lane-padded to 128 for the MXU;
    # only the first `outputs` columns are stored (slim HBM writeback).
    out = jnp.dot(h2.astype(w3_ref.dtype), w3_ref[...],
                  preferred_element_type=jnp.float32)
    out = out + b3_ref[...]
    o_ref[...] = out[:, : o_ref.shape[1]].astype(o_ref.dtype)


def dqn_forward(x, params, outputs, *, tile_b=4096):
    """x: [B, F] float32.  params: weights [in, out_pad] in the compute dtype
    (bf16 by default), biases [1, out_pad] float32; hidden/output dims are
    zero-padded to 128 lanes (exactly neutral through matmul + bias + ReLU)."""
    B, F = x.shape
    H_pad = params["w1"].shape[1]
    O_pad = params["w3"].shape[1]
    w_itemsize = jnp.dtype(params["w1"].dtype).itemsize

    # ---- Batch tiling.  No wrapper-side jnp.pad: Pallas masks the ragged tail
    # (OOB input rows read unspecified data, OOB output rows are discarded).
    if B <= 8:
        tile_b = B  # single full-array block (legal: equals full array dim)
    else:
        B8 = _round_up(B, 8)
        # >= 2 grid steps whenever possible so the "parallel" axis actually
        # shards across v7x's two TensorCores (no-op on 1-TC v5e/v6e).
        n_steps = max(pl.cdiv(B8, tile_b), 2)
        tile_b = min(_round_up(pl.cdiv(B8, n_steps), 8), B8)
    grid_b = pl.cdiv(B, tile_b)

    # ---- VMEM budget (lane-padded) and cost estimate.
    lanes_F = _round_up(F, LANE)
    lanes_O = _round_up(outputs, LANE)
    w_bytes = (F * H_pad + H_pad * H_pad + H_pad * O_pad) * w_itemsize
    b_bytes = 3 * 8 * LANE * 4
    vmem_need = (
        2 * tile_b * lanes_F * 4       # x tile, double-buffered, lane-padded f32
        + 2 * tile_b * lanes_O * 4     # out tile, double-buffered (lane-padded in VMEM)
        + 4 * tile_b * H_pad * 4       # h1/h2 f32 intermediates + bf16 copies (headroom)
        + 2 * (w_bytes + b_bytes)      # resident weights/biases
    )
    vmem_limit = min(48 * 1024 * 1024, max(16 * 1024 * 1024, 2 * vmem_need))

    flops = 2 * B * (F * H_pad + H_pad * H_pad + H_pad * O_pad)
    bytes_accessed = B * F * 4 + B * outputs * 4 + w_bytes + 3 * LANE * 4
    cost = pl.CostEstimate(flops=flops, transcendentals=0,
                           bytes_accessed=int(bytes_accessed))

    out = pl.pallas_call(
        dqn_kernel,
        out_shape=jax.ShapeDtypeStruct((B, outputs), jnp.float32),
        grid_spec=pltpu.PrefetchScalarGridSpec(
            num_scalar_prefetch=0,
            grid=(grid_b,),
            in_specs=[
                pl.BlockSpec((tile_b, F), lambda i: (i, 0)),     # x: batch-tiled
                pl.BlockSpec((F, H_pad), lambda i: (0, 0)),      # w1: VMEM-resident
                pl.BlockSpec((1, H_pad), lambda i: (0, 0)),      # b1: resident
                pl.BlockSpec((H_pad, H_pad), lambda i: (0, 0)),  # w2: resident
                pl.BlockSpec((1, H_pad), lambda i: (0, 0)),      # b2: resident
                pl.BlockSpec((H_pad, O_pad), lambda i: (0, 0)),  # w3: resident
                pl.BlockSpec((1, O_pad), lambda i: (0, 0)),      # b3: resident
            ],
            # Slim output: block last dim equals the full array dim (`outputs`),
            # so the padded 128-lane columns never hit HBM.
            # TODO(synk): if the narrow masked store profiles badly on v5e,
            # fall back to a lane-dense 128-wide bf16 output there.
            out_specs=pl.BlockSpec((tile_b, outputs), lambda i: (i, 0)),
        ),
        compiler_params=pltpu.CompilerParams(
            dimension_semantics=("parallel",),
            vmem_limit_bytes=int(vmem_limit),
        ),
        cost_estimate=cost,
    )(x, params["w1"], params["b1"], params["w2"], params["b2"],
      params["w3"], params["b3"])
    return out


def init_params(key, inputs, outputs, hidden=32, compute_dtype=jnp.bfloat16):
    """nn.Linear-style init; weights stored transposed [in, out], zero-padded
    to 128 lanes on hidden/output dims and cast once to the compute dtype.
    Biases stay float32 (added to the f32 accumulators)."""
    ks = jax.random.split(key, 6)
    H_pad = _round_up(hidden, LANE)
    O_pad = _round_up(outputs, LANE)

    def linear(kw, kb, fan_in, fan_out, pad_in, pad_out):
        bound = 1.0 / math.sqrt(float(fan_in))
        w = jax.random.uniform(kw, (fan_in, fan_out), jnp.float32, -bound, bound)
        b = jax.random.uniform(kb, (1, fan_out), jnp.float32, -bound, bound)
        w = jnp.pad(w, ((0, pad_in - fan_in), (0, pad_out - fan_out)))
        b = jnp.pad(b, ((0, 0), (0, pad_out - fan_out)))
        return w.astype(compute_dtype), b

    w1, b1 = linear(ks[0], ks[1], inputs, hidden, inputs, H_pad)
    w2, b2 = linear(ks[2], ks[3], hidden, hidden, H_pad, H_pad)
    w3, b3 = linear(ks[4], ks[5], hidden, outputs, H_pad, O_pad)
    return {"w1": w1, "b1": b1, "w2": w2, "b2": b2, "w3": w3, "b3": b3}


def dqn_reference(x, p, outputs):
    """Pure-JAX reference with the same numerics as the kernel
    (compute-dtype matmul inputs, f32 accumulation, f32 bias/ReLU)."""
    cdt = p["w1"].dtype
    h1 = jnp.maximum(
        jnp.dot(x.astype(cdt), p["w1"], preferred_element_type=jnp.float32)
        + p["b1"], 0.0)
    h2 = jnp.maximum(
        jnp.dot(h1.astype(cdt), p["w2"], preferred_element_type=jnp.float32)
        + p["b2"], 0.0)
    out = jnp.dot(h2.astype(cdt), p["w3"], preferred_element_type=jnp.float32) \
        + p["b3"]
    return out[:, :outputs]


if __name__ == "__main__":
    key = jax.random.PRNGKey(0)
    k_x, k_p, k_x2 = jax.random.split(key, 3)

    batch, inputs, outputs = 8, 16, 4
    params = init_params(k_p, inputs, outputs)

    # Small test: single grid step, full-array batch block.
    x = jax.random.normal(k_x, (batch, inputs), jnp.float32)
    out = jax.block_until_ready(dqn_forward(x, params, outputs))
    ref = dqn_reference(x, params, outputs)
    assert out.shape == (batch, outputs)
    assert jnp.allclose(out, ref, atol=2e-3, rtol=2e-3), "mismatch vs reference (small)"

    # Gridded test: >=2 grid steps plus a ragged (non-multiple-of-8) batch tail
    # exercising Pallas' OOB block masking (no wrapper-side jnp.pad of x).
    batch2 = 203
    x2 = jax.random.normal(k_x2, (batch2, inputs), jnp.float32)
    out2 = jax.block_until_ready(dqn_forward(x2, params, outputs))
    ref2 = dqn_reference(x2, params, outputs)
    assert out2.shape == (batch2, outputs)
    assert jnp.allclose(out2, ref2, atol=2e-3, rtol=2e-3), "mismatch vs reference (gridded)"

    print("KERNEL_OK")
</pallas_src>

<mosaic_0001>
module attributes {stable_mosaic.version = 11 : i64} {
  func.func @dqn_kernel(%arg0: i32, %arg1: memref<8x16xf32, #tpu.memory_space<vmem>>, %arg2: memref<16x128xbf16, #tpu.memory_space<vmem>>, %arg3: memref<1x128xf32, #tpu.memory_space<vmem>>, %arg4: memref<128x128xbf16, #tpu.memory_space<vmem>>, %arg5: memref<1x128xf32, #tpu.memory_space<vmem>>, %arg6: memref<128x128xbf16, #tpu.memory_space<vmem>>, %arg7: memref<1x128xf32, #tpu.memory_space<vmem>>, %arg8: memref<8x4xf32, #tpu.memory_space<vmem>>) attributes {dimension_semantics = [#tpu.dimension_semantics<parallel>], iteration_bounds = array<i64: 1>, scalar_prefetch = 0 : i64, scratch_operands = 0 : i64, tpu.core_type = #tpu.core_type<tc>, window_params = [{transform_indices = @transform_0, window_bounds = array<i64: 8, 16>}, {pipeline_mode = #tpu.pipeline_mode<synchronous>, transform_indices = @transform_1, window_bounds = array<i64: 16, 128>}, {pipeline_mode = #tpu.pipeline_mode<synchronous>, transform_indices = @transform_2, window_bounds = array<i64: 1, 128>}, {pipeline_mode = #tpu.pipeline_mode<synchronous>, transform_indices = @transform_3, window_bounds = array<i64: 128, 128>}, {pipeline_mode = #tpu.pipeline_mode<synchronous>, transform_indices = @transform_4, window_bounds = array<i64: 1, 128>}, {pipeline_mode = #tpu.pipeline_mode<synchronous>, transform_indices = @transform_5, window_bounds = array<i64: 128, 128>}, {pipeline_mode = #tpu.pipeline_mode<synchronous>, transform_indices = @transform_6, window_bounds = array<i64: 1, 128>}, {transform_indices = @transform_7, window_bounds = array<i64: 8, 4>}]} {
    %c0 = arith.constant 0 : index
    %c0_0 = arith.constant 0 : index
    %0 = vector.load %arg1[%c0, %c0_0] : memref<8x16xf32, #tpu.memory_space<vmem>>, vector<8x16xf32>
    %1 = arith.truncf %0 : vector<8x16xf32> to vector<8x16xbf16>
    %c0_1 = arith.constant 0 : index
    %c0_2 = arith.constant 0 : index
    %2 = vector.load %arg2[%c0_1, %c0_2] : memref<16x128xbf16, #tpu.memory_space<vmem>>, vector<16x128xbf16>
    %cst = arith.constant dense<0.000000e+00> : vector<8x128xf32>
    %3 = tpu.matmul %1, %2, %cst {dimension_numbers = #tpu.dot_dimension_numbers<[1], [0], [0], [1], [0, 0, 1, 1], [], []>} : vector<8x16xbf16>, vector<16x128xbf16>, vector<8x128xf32> -> vector<8x128xf32>
    %c0_3 = arith.constant 0 : index
    %c0_4 = arith.constant 0 : index
    %4 = vector.load %arg3[%c0_3, %c0_4] : memref<1x128xf32, #tpu.memory_space<vmem>>, vector<1x128xf32>
    %5 = vector.broadcast %4 : vector<1x128xf32> to vector<8x128xf32>
    %6 = arith.addf %3, %5 : vector<8x128xf32>
    %cst_5 = arith.constant 0.000000e+00 : f32
    %7 = vector.broadcast %cst_5 : f32 to vector<8x128xf32>
    %8 = arith.maximumf %6, %7 : vector<8x128xf32>
    %9 = arith.truncf %8 : vector<8x128xf32> to vector<8x128xbf16>
    %c0_6 = arith.constant 0 : index
    %c0_7 = arith.constant 0 : index
    %10 = vector.load %arg4[%c0_6, %c0_7] : memref<128x128xbf16, #tpu.memory_space<vmem>>, vector<128x128xbf16>
    %cst_8 = arith.constant dense<0.000000e+00> : vector<8x128xf32>
    %11 = tpu.matmul %9, %10, %cst_8 {dimension_numbers = #tpu.dot_dimension_numbers<[1], [0], [0], [1], [0, 0, 1, 1], [], []>} : vector<8x128xbf16>, vector<128x128xbf16>, vector<8x128xf32> -> vector<8x128xf32>
    %c0_9 = arith.constant 0 : index
    %c0_10 = arith.constant 0 : index
    %12 = vector.load %arg5[%c0_9, %c0_10] : memref<1x128xf32, #tpu.memory_space<vmem>>, vector<1x128xf32>
    %13 = vector.broadcast %12 : vector<1x128xf32> to vector<8x128xf32>
    %14 = arith.addf %11, %13 : vector<8x128xf32>
    %cst_11 = arith.constant 0.000000e+00 : f32
    %15 = vector.broadcast %cst_11 : f32 to vector<8x128xf32>
    %16 = arith.maximumf %14, %15 : vector<8x128xf32>
    %17 = arith.truncf %16 : vector<8x128xf32> to vector<8x128xbf16>
    %c0_12 = arith.constant 0 : index
    %c0_13 = arith.constant 0 : index
    %18 = vector.load %arg6[%c0_12, %c0_13] : memref<128x128xbf16, #tpu.memory_space<vmem>>, vector<128x128xbf16>
    %cst_14 = arith.constant dense<0.000000e+00> : vector<8x128xf32>
    %19 = tpu.matmul %17, %18, %cst_14 {dimension_numbers = #tpu.dot_dimension_numbers<[1], [0], [0], [1], [0, 0, 1, 1], [], []>} : vector<8x128xbf16>, vector<128x128xbf16>, vector<8x128xf32> -> vector<8x128xf32>
    %c0_15 = arith.constant 0 : index
    %c0_16 = arith.constant 0 : index
    %20 = vector.load %arg7[%c0_15, %c0_16] : memref<1x128xf32, #tpu.memory_space<vmem>>, vector<1x128xf32>
    %21 = vector.broadcast %20 : vector<1x128xf32> to vector<8x128xf32>
    %22 = arith.addf %19, %21 : vector<8x128xf32>
    %23 = vector.extract_strided_slice %22 {offsets = [0, 0], sizes = [8, 4], strides = [1, 1]} : vector<8x128xf32> to vector<8x4xf32>
    %c0_17 = arith.constant 0 : index
    %c0_18 = arith.constant 0 : index
    %24 = vector.load %arg8[%c0_17, %c0_18] : memref<8x4xf32, #tpu.memory_space<vmem>>, vector<8x4xf32>
    tpu.vector_store %arg8[%c0_17, %c0_18], %23 {strides = array<i32>} : memref<8x4xf32, #tpu.memory_space<vmem>>, vector<8x4xf32>,
    return
  }
  func.func @transform_0(%arg0: i32) -> (i32, i32) {
    %c0_i32 = arith.constant 0 : i32
    %c0_i32_0 = arith.constant 0 : i32
    return %arg0, %c0_i32 : i32, i32
  }
  func.func @transform_1(%arg0: i32) -> (i32, i32) {
    %c0_i32 = arith.constant 0 : i32
    %c0_i32_0 = arith.constant 0 : i32
    %c0_i32_1 = arith.constant 0 : i32
    return %c0_i32, %c0_i32_0 : i32, i32
  }
  func.func @transform_2(%arg0: i32) -> (i32, i32) {
    %c0_i32 = arith.constant 0 : i32
    %c0_i32_0 = arith.constant 0 : i32
    %c0_i32_1 = arith.constant 0 : i32
    return %c0_i32, %c0_i32_0 : i32, i32
  }
  func.func @transform_3(%arg0: i32) -> (i32, i32) {
    %c0_i32 = arith.constant 0 : i32
    %c0_i32_0 = arith.constant 0 : i32
    %c0_i32_1 = arith.constant 0 : i32
    return %c0_i32, %c0_i32_0 : i32, i32
  }
  func.func @transform_4(%arg0: i32) -> (i32, i32) {
    %c0_i32 = arith.constant 0 : i32
    %c0_i32_0 = arith.constant 0 : i32
    %c0_i32_1 = arith.constant 0 : i32
    return %c0_i32, %c0_i32_0 : i32, i32
  }
  func.func @transform_5(%arg0: i32) -> (i32, i32) {
    %c0_i32 = arith.constant 0 : i32
    %c0_i32_0 = arith.constant 0 : i32
    %c0_i32_1 = arith.constant 0 : i32
    return %c0_i32, %c0_i32_0 : i32, i32
  }
  func.func @transform_6(%arg0: i32) -> (i32, i32) {
    %c0_i32 = arith.constant 0 : i32
    %c0_i32_0 = arith.constant 0 : i32
    %c0_i32_1 = arith.constant 0 : i32
    return %c0_i32, %c0_i32_0 : i32, i32
  }
  func.func @transform_7(%arg0: i32) -> (i32, i32) {
    %c0_i32 = arith.constant 0 : i32
    %c0_i32_0 = arith.constant 0 : i32
    return %arg0, %c0_i32 : i32, i32
  }
}

</mosaic_0001>

<bundles_post_ra>
// kernel: tpu_custom_call.1
= control target key start
LH: loop header
LB: loop body
LE: loop exit
PB: predicated region body
PF: predicated region fallthrough
CT: control target
= control target key end

     0   :  { %12 = vsyncpa [#allocation3], 0  ;;  %s561_s0 = inlined_call_operand.hbm [shape: f32[8,16], index: 0, kind: input, shape index: {}]   ;;  %s562_s1 = inlined_call_operand.hbm [shape: bf16[16,128], index: 1, kind: input, shape index: {}]   ;;  %s563_s2 = inlined_call_operand.vmem [shape: f32[1,128], index: 2, kind: input, shape index: {}]   ;;  %s564_s3 = inlined_call_operand.hbm [shape: bf16[128,128], index: 3, kind: input, shape index: {}]   ;;  %s565_s4 = inlined_call_operand.vmem [shape: f32[1,128], index: 4, kind: input, shape index: {}]   ;;  %s566_s5 = inlined_call_operand.hbm [shape: bf16[128,128], index: 5, kind: input, shape index: {}]   ;;  %s567_s6 = inlined_call_operand.vmem [shape: f32[1,128], index: 6, kind: input, shape index: {}]   ;;  %s568_s7 = inlined_call_operand.vmem [shape: f32[8,4], index: 7, kind: output, shape index: {}]  }
   0x1   :  { %13 = vsyncpa [#allocation5], 0  ;;  %s30_s26 = sshll.u32 %s562_s1, 4  ;;  %s31_s26 = int_to_ptr.hbm [resolvable:$true] %s30_s26 }
   0x2   :  { %14 = vsyncpa [#allocation8], 0  ;;  %s491_s27 = smov [#allocation4]   ;;  %s20_s8 = sshll.u32 %s561_s0, 4  ;;  %s21_s8 = int_to_ptr.hbm [resolvable:$true] %s20_s8 }
   0x3   :  { %s32_s28 = sshll.u32 %s491_s27, 4  ;;  %s492_s9 = smov 64   ;;  %s33_s28 = int_to_ptr.vmem [resolvable:$true] %s32_s28 }
   0x4   :  { %s493_s10 = smov 4   ;;  %s494_s11 = smov [#allocation2]  }
   0x5   :  { %38 = dma.hbm_to_vmem [thread:$0]  %s31_s26, 128, %s33_s28, [#allocation5], %s492_s9, %s492_s9, %s493_s10  }
   0x6   :  { %s22_s12 = sshll.u32 %s494_s11, 4  ;;  %s45_s15 = sshll.u32 %s564_s3, 4  ;;  %s23_s12 = int_to_ptr.vmem [resolvable:$true] %s22_s12  ;;  %s46_s15 = int_to_ptr.hbm [resolvable:$true] %s45_s15 }
   0x7   :  { %25 = dma.hbm_to_vmem [thread:$0]  %s21_s8, 128, %s23_s12, [#allocation3]  }
   0x8   :  { %s60_s17 = sshll.u32 %s566_s5, 4  ;;  %s495_s18 = smov [#allocation6]   ;;  %s61_s17 = int_to_ptr.hbm [resolvable:$true] %s60_s17 }
   0x9   :  { %s47_s19 = sshll.u32 %s495_s18, 4  ;;  %s496_s0 = smov [#allocation7]   ;;  %s48_s19 = int_to_ptr.vmem [resolvable:$true] %s47_s19 }
   0xa   :  { %53 = dma.hbm_to_vmem [thread:$0]  %s46_s15, 1024, %s48_s19, [#allocation5], %s492_s9, %s492_s9, %s493_s10  }
   0xb   :  { %s62_s20 = sshll.u32 %s496_s0, 4  ;;  %s63_s20 = int_to_ptr.vmem [resolvable:$true] %s62_s20 }
   0xc   :  { %68 = dma.hbm_to_vmem [thread:$0]  %s61_s17, 1024, %s63_s20, [#allocation8], %s492_s9, %s492_s9, %s493_s10  }
   0xd   :  { %485 = dma.done.wait [#allocation3], 128  }
   0xe   :  { %486 = vsyncadd [#allocation3], 4294967168 }
   0xf   :  { %487 = dma.done.wait [#allocation5], 1152  }
  0x10   :  { %488 = vsyncadd [#allocation5], 4294966144 }
  0x11   :  { %489 = dma.done.wait [#allocation8], 1024  }
  0x12   :  { %490 = vsyncadd [#allocation8], 4294966272  ;;  %v363_v0 = vld [vmem:[#allocation4] sm:$0xff]  ;;  %v88_v1 = vld [vmem:[#allocation2] sm:$0xff]  ;;  %vm102_vm0 = vcmask 130048   ;;  %vm285_vm1 = vcmask 31744  }
  0x13   :  { %v371_v2 = vld [vmem:[#allocation6 + $0x38] sm:$0xff]  ;;  %v89_v3 = vpack.c.bf16 %v88_v1, %v88_v1  ;;  %113 = vmatpush.bf16.msra.mxu0 %v363_v0  ;;  %v370_v4 = vld [vmem:[#allocation6 + $0x30] sm:$0xff]  ;;  %v369_v5 = vld [vmem:[#allocation6 + $0x28] sm:$0xff] }
  0x14   :  { %189 = vmatpush.bf16.msra.mxu1 %v371_v2  ;;  %v368_v6 = vld [vmem:[#allocation6 + $0x20] sm:$0xff]  ;;  %v367_v7 = vld [vmem:[#allocation6 + $0x18] sm:$0xff]  ;;  %v366_v8 = vld [vmem:[#allocation6 + $0x10] sm:$0xff] }
  0x15   :  { %v365_v9 = vld [vmem:[#allocation6 + $0x8] sm:$0xff]  ;;  %v364_v10 = vld [vmem:[#allocation6] sm:$0xff]  ;;  %v379_v11 = vld [vmem:[#allocation7 + $0x38] sm:$0xff] }
  0x16   :  { %298 = vmatmul.msk.bf16.vlgmr.msra.gmra.mxu0 %vm102_vm0, %v89_v3  ;;  %272 = vmatpush.bf16.msra.mxu2 %v379_v11  ;;  %v378_v12 = vld [vmem:[#allocation7 + $0x30] sm:$0xff]  ;;  %v377_v13 = vld [vmem:[#allocation7 + $0x28] sm:$0xff]  ;;  %v376_v14 = vld [vmem:[#allocation7 + $0x20] sm:$0xff] }
  0x17   :  { %v375_v15 = vld [vmem:[#allocation7 + $0x18] sm:$0xff]  ;;  %v374_v16 = vld [vmem:[#allocation7 + $0x10] sm:$0xff]  ;;  %v373_v23 = vld [vmem:[#allocation7 + $0x8] sm:$0xff] }
  0x18   :  { %190 = vmatpush.bf16.msra.mxu1 %v370_v4  ;;  %v386_v17 = vld [vmem:[%s563_s2] ss:$0 sm:$0xff]  ;;  %v372_v24 = vld [vmem:[#allocation7] sm:$0xff] }
  0x19   :  { %v387_v25 = vld [vmem:[%s565_s4] ss:$0 sm:$0xff] }
  0x1a   :  { %273 = vmatpush.bf16.msra.mxu2 %v378_v12  ;;  %v388_v31 = vld [vmem:[%s567_s6] ss:$0 sm:$0xff] }
  0x1c   :  { %191 = vmatpush.bf16.msra.mxu1 %v369_v5 }
  0x1e   :  { %274 = vmatpush.bf16.msra.mxu2 %v377_v13 }
  0x20   :  { %192 = vmatpush.bf16.msra.mxu1 %v368_v6 }
  0x22   :  { %275 = vmatpush.bf16.msra.mxu2 %v376_v14 }
  0x24   :  { %193 = vmatpush.bf16.msra.mxu1 %v367_v7 }
  0x26   :  { %276 = vmatpush.bf16.msra.mxu2 %v375_v15 }
  0x28   :  { %194 = vmatpush.bf16.msra.mxu1 %v366_v8 }
  0x2a   :  { %277 = vmatpush.bf16.msra.mxu2 %v374_v16 }
  0x2c   :  { %195 = vmatpush.bf16.msra.mxu1 %v365_v9 }
  0x2e   :  { %278 = vmatpush.bf16.msra.mxu2 %v373_v23 }
  0x30   :  { %196 = vmatpush.bf16.msra.mxu1 %v364_v10 }
  0x32   :  { %279 = vmatpush.bf16.msra.mxu2 %v372_v24 }
  0x93   :  { %v115_v18 = vpop.f32.mrf.mxu0 }
  0x94   :  { %v116_v19 = vadd.f32 %v386_v17, %v115_v18 }
  0x96   :  { %v119_v20 = vmax.f32 %v116_v19, 0.0 }
  0x98   :  { %v120_v21 = vpack.c.bf16 %v119_v20, %v119_v20 }
  0x9a   :  { %197 = vmatmul.bf16.vlgmr.msra.gmra.mxu1 %v120_v21 }
  0x9b   :  { %v117_v22 = vpop.f32.mrf.mxu0 }
 0x117   :  { %v198_v26 = vpop.f32.mrf.mxu1 }
 0x118   :  { %v199_v27 = vadd.f32 %v387_v25, %v198_v26 }
 0x11a   :  { %v202_v28 = vmax.f32 %v199_v27, 0.0 }
 0x11c   :  { %v203_v29 = vpack.c.bf16 %v202_v28, %v202_v28 }
 0x11e   :  { %280 = vmatmul.bf16.vlgmr.msra.gmra.mxu2 %v203_v29 }
 0x11f   :  { %v200_v30 = vpop.f32.mrf.mxu1 }
 0x1a1   :  { %v281_v32 = vpop.f32.mrf.mxu2 }
 0x1a2   :  { %v282_v33 = vadd.f32 %v388_v31, %v281_v32 }
 0x1a4   :  { %286 = vst.msk [vmem:[%s568_s7] sm:$0xff] %vm285_vm1, %v282_v33 }
 0x1a9   :  { %v283_v34 = vpop.f32.mrf.mxu2 }
 0x1aa   :  { %291 = vsyncpa [#allocation3], 1 }
 0x1ab   :  { %292 = vsyncpa [#allocation5], 1 }
 0x1ac   :  { %293 = vsyncpa [#allocation8], 1 }

</bundles_post_ra>
